<compile_context>
chip_gen: v7x
topology: tpu7x:2x2x1
jax: 0.10.0
libtpu: 0.0.40
codegen_flags: <defaults>
</compile_context>

<pallas_src>
import math

import jax
import jax.numpy as jnp
import numpy as np
from jax import lax
from jax.experimental import pallas as pl
from jax.experimental.pallas import tpu as pltpu


# ---------------------------------------------------------------------------
# Kernels
# ---------------------------------------------------------------------------

def _make_rope_kernel(scaling_factor, out_dtype):
    """General path: positions are read from HBM per (batch, seq-tile) block."""

    def kernel(pos_ref, invf_ref, cos_ref, sin_ref):
        # pos_ref : (1, TS, 1)   int32   (positions on the sublane axis)
        # invf_ref: (1, 1, dim)  float32 (full-width, duplicated, inv. freqs)
        pos = pos_ref[...].astype(jnp.float32)              # (1, TS, 1)
        freqs = pos * invf_ref[...]                          # (1, TS, dim) f32
        c = jnp.cos(freqs)
        s = jnp.sin(freqs)
        if scaling_factor != 1.0:
            c = c * scaling_factor
            s = s * scaling_factor
        cos_ref[...] = c.astype(out_dtype)
        sin_ref[...] = s.astype(out_dtype)

    return kernel


def _make_rope_arange_kernel(scaling_factor, out_dtype, seq_tile, dim):
    """Fast path for contiguous arange positions: no position input at all."""

    def kernel(invf_ref, cos_ref, sin_ref):
        start = pl.program_id(1) * seq_tile
        # Canonical sublane iota pattern: positions vary along the second-minor
        # dim, constant along lanes.
        pos = (start + lax.broadcasted_iota(jnp.int32, (1, seq_tile, dim), 1)
               ).astype(jnp.float32)                         # (1, TS, dim)
        freqs = pos * invf_ref[...]                          # (1, TS, dim) f32
        c = jnp.cos(freqs)
        s = jnp.sin(freqs)
        if scaling_factor != 1.0:
            c = c * scaling_factor
            s = s * scaling_factor
        cos_ref[...] = c.astype(out_dtype)
        sin_ref[...] = s.astype(out_dtype)

    return kernel


# ---------------------------------------------------------------------------
# Wrapper
# ---------------------------------------------------------------------------

def _sublane_tile(dtype):
    # native sublane tile: 8 for 4-byte, 16 for 2-byte, 32 for 1-byte dtypes
    return max(8, 32 // jnp.dtype(dtype).itemsize)


def _pick_seq_tile(dim, out_itemsize, vmem_budget_bytes):
    # Per sequence position, the per-grid-step VMEM footprint is roughly:
    #   2 outputs x 2 pipeline buffers x dim x out_itemsize   (cos/sin blocks)
    # + 2 pipeline buffers x 128 lanes x 4B                   (padded pos block)
    # + ~3 x dim x 4B                                         (f32 temporaries)
    per_pos = 4 * dim * out_itemsize + 2 * 128 * 4 + 3 * dim * 4
    seq_tile = vmem_budget_bytes // per_pos
    # beyond ~8 MiB per output block there is no further roofline benefit
    seq_tile = min(seq_tile, (8 * 1024 * 1024) // max(1, dim * out_itemsize))
    return max(1, int(seq_tile))


def phi3_yarn_rope(
    x,
    position_ids,
    *,
    dim,
    base,
    max_position_embeddings,
    original_max_position_embeddings,
    short_factor,
    long_factor,
    seq_tile=None,
    contiguous_positions=False,
    vmem_budget_bytes=40 * 1024 * 1024,
):
    """Returns (cos, sin), each of shape (B, S, dim), dtype = x.dtype.

    If ``contiguous_positions`` is True, position_ids is assumed to equal
    arange(S) broadcast over the batch (standard prefill); the kernel then
    synthesizes positions in-register and never reads the position input.
    """
    B, S = position_ids.shape
    out_dtype = x.dtype
    out_itemsize = jnp.dtype(out_dtype).itemsize

    # --- data-dependent short/long rescale-factor selection (plain JAX) ----
    seq_len = jnp.max(position_ids) + 1
    short = jnp.asarray(short_factor, dtype=jnp.float32)
    long = jnp.asarray(long_factor, dtype=jnp.float32)
    ext_factors = jnp.where(seq_len > original_max_position_embeddings, long, short)
    inv_freq_shape = jnp.arange(0, dim, 2, dtype=jnp.float32) / dim
    inv_freq = 1.0 / (ext_factors * (base ** inv_freq_shape))        # (dim//2,)
    # duplicate to full width in the wrapper -> kernel stores directly
    inv_freq_full = jnp.concatenate([inv_freq, inv_freq]).reshape(1, 1, dim)

    # yarn attention scaling factor (static, config-only)
    scale = max_position_embeddings / original_max_position_embeddings
    scaling_factor = 1.0 if scale <= 1.0 else 0.1 * math.log(scale) + 1.0

    # --- sequence tiling under an explicit VMEM budget ---------------------
    sublane = _sublane_tile(out_dtype)
    if seq_tile is None:
        seq_tile = _pick_seq_tile(dim, out_itemsize, vmem_budget_bytes)
    seq_tile = min(int(seq_tile), S)
    if seq_tile < S:
        seq_tile = max(sublane, (seq_tile // sublane) * sublane)
    num_s_tiles = pl.cdiv(S, seq_tile)

    out_shape = (
        jax.ShapeDtypeStruct((B, S, dim), out_dtype),
        jax.ShapeDtypeStruct((B, S, dim), out_dtype),
    )
    out_specs = [
        pl.BlockSpec((1, seq_tile, dim), lambda b, s: (b, s, 0)),
        pl.BlockSpec((1, seq_tile, dim), lambda b, s: (b, s, 0)),
    ]
    invf_spec = pl.BlockSpec((1, 1, dim), lambda b, s: (0, 0, 0))

    cost = pl.CostEstimate(
        flops=3 * B * S * dim,
        transcendentals=2 * B * S * dim,
        bytes_accessed=2 * B * S * dim * out_itemsize + B * S * 4 + dim * 4,
    )
    compiler_params = pltpu.CompilerParams(
        dimension_semantics=("parallel", "parallel"),
        vmem_limit_bytes=max(int(vmem_budget_bytes), 32 * 1024 * 1024),
    )

    if contiguous_positions:
        kernel = _make_rope_arange_kernel(scaling_factor, out_dtype, seq_tile, dim)
        cos, sin = pl.pallas_call(
            kernel,
            out_shape=out_shape,
            grid_spec=pltpu.PrefetchScalarGridSpec(
                num_scalar_prefetch=0,
                grid=(B, num_s_tiles),
                in_specs=[invf_spec],
                out_specs=out_specs,
            ),
            compiler_params=compiler_params,
            cost_estimate=cost,
        )(inv_freq_full)
    else:
        pos = position_ids.reshape(B, S, 1)    # int32 pass-through; cast in-kernel
        kernel = _make_rope_kernel(scaling_factor, out_dtype)
        cos, sin = pl.pallas_call(
            kernel,
            out_shape=out_shape,
            grid_spec=pltpu.PrefetchScalarGridSpec(
                num_scalar_prefetch=0,
                grid=(B, num_s_tiles),
                in_specs=[
                    pl.BlockSpec((1, seq_tile, 1), lambda b, s: (b, s, 0)),
                    invf_spec,
                ],
                out_specs=out_specs,
            ),
            compiler_params=compiler_params,
            cost_estimate=cost,
        )(pos, inv_freq_full)
    return cos, sin


# ---------------------------------------------------------------------------
# Pure-JAX reference mirroring the torch module
# ---------------------------------------------------------------------------

def _reference(x, position_ids, **cfg):
    dim = cfg["dim"]
    base = cfg["base"]
    seq_len = jnp.max(position_ids) + 1
    short = jnp.asarray(cfg["short_factor"], dtype=jnp.float32)
    long = jnp.asarray(cfg["long_factor"], dtype=jnp.float32)
    ext = jnp.where(seq_len > cfg["original_max_position_embeddings"], long, short)
    shape = jnp.arange(0, dim, 2).astype(jnp.float32) / dim
    inv_freq = 1.0 / (ext * (base ** shape))
    freqs = position_ids.astype(jnp.float32)[:, :, None] * inv_freq[None, None, :]
    emb = jnp.concatenate([freqs, freqs], axis=-1)
    scale = cfg["max_position_embeddings"] / cfg["original_max_position_embeddings"]
    sf = 1.0 if scale <= 1.0 else 0.1 * math.log(scale) + 1.0
    return (jnp.cos(emb) * sf).astype(x.dtype), (jnp.sin(emb) * sf).astype(x.dtype)


if __name__ == "__main__":
    # small, deterministic config
    B, S, DIM = 2, 8, 32
    cfg = dict(
        dim=DIM,
        base=10000.0,
        max_position_embeddings=8192,
        original_max_position_embeddings=4096,
        short_factor=[1.0 + 0.01 * i for i in range(DIM // 2)],
        long_factor=[1.0 + 0.10 * i for i in range(DIM // 2)],
    )

    key = jax.random.PRNGKey(0)
    x = jax.random.normal(key, (B, S, DIM), dtype=jnp.float32)  # only dtype is used
    position_ids = jnp.broadcast_to(jnp.arange(S, dtype=jnp.int32)[None, :], (B, S))

    cos_ref, sin_ref = _reference(x, position_ids, **cfg)

    # general path (positions loaded from HBM)
    cos, sin = phi3_yarn_rope(x, position_ids, **cfg)
    cos, sin = jax.block_until_ready((cos, sin))
    np.testing.assert_allclose(np.asarray(cos), np.asarray(cos_ref), atol=1e-4, rtol=1e-4)
    np.testing.assert_allclose(np.asarray(sin), np.asarray(sin_ref), atol=1e-4, rtol=1e-4)

    # contiguous-arange fast path (no position input; in-kernel iota)
    cos2, sin2 = phi3_yarn_rope(x, position_ids, contiguous_positions=True, **cfg)
    cos2, sin2 = jax.block_until_ready((cos2, sin2))
    np.testing.assert_allclose(np.asarray(cos2), np.asarray(cos_ref), atol=1e-4, rtol=1e-4)
    np.testing.assert_allclose(np.asarray(sin2), np.asarray(sin_ref), atol=1e-4, rtol=1e-4)

    print("KERNEL_OK")
</pallas_src>

<mosaic_0001>
module attributes {stable_mosaic.version = 11 : i64} {
  func.func @kernel(%arg0: i32, %arg1: i32, %arg2: memref<1x8x1xi32, #tpu.memory_space<vmem>>, %arg3: memref<1x1x32xf32, #tpu.memory_space<vmem>>, %arg4: memref<1x8x32xf32, #tpu.memory_space<vmem>>, %arg5: memref<1x8x32xf32, #tpu.memory_space<vmem>>) attributes {dimension_semantics = [#tpu.dimension_semantics<parallel>, #tpu.dimension_semantics<parallel>], iteration_bounds = array<i64: 2, 1>, scalar_prefetch = 0 : i64, scratch_operands = 0 : i64, tpu.core_type = #tpu.core_type<tc>, window_params = [{transform_indices = @transform_0, window_bounds = array<i64: 1, 8, 1>}, {pipeline_mode = #tpu.pipeline_mode<synchronous>, transform_indices = @transform_1, window_bounds = array<i64: 1, 1, 32>}, {transform_indices = @transform_2, window_bounds = array<i64: 1, 8, 32>}, {transform_indices = @transform_3, window_bounds = array<i64: 1, 8, 32>}]} {
    %c0 = arith.constant 0 : index
    %c0_0 = arith.constant 0 : index
    %c0_1 = arith.constant 0 : index
    %0 = vector.load %arg2[%c0, %c0_0, %c0_1] : memref<1x8x1xi32, #tpu.memory_space<vmem>>, vector<1x8x1xi32>
    %1 = arith.sitofp %0 : vector<1x8x1xi32> to vector<1x8x1xf32>
    %c0_2 = arith.constant 0 : index
    %c0_3 = arith.constant 0 : index
    %c0_4 = arith.constant 0 : index
    %2 = vector.load %arg3[%c0_2, %c0_3, %c0_4] : memref<1x1x32xf32, #tpu.memory_space<vmem>>, vector<1x1x32xf32>
    %3 = vector.broadcast %1 : vector<1x8x1xf32> to vector<1x8x32xf32>
    %4 = vector.broadcast %2 : vector<1x1x32xf32> to vector<1x8x32xf32>
    %5 = arith.mulf %3, %4 : vector<1x8x32xf32>
    %6 = math.cos %5 : vector<1x8x32xf32>
    %7 = math.sin %5 : vector<1x8x32xf32>
    %cst = arith.constant 1.06931472 : f32
    %8 = vector.broadcast %cst : f32 to vector<1x8x32xf32>
    %9 = arith.mulf %6, %8 : vector<1x8x32xf32>
    %cst_5 = arith.constant 1.06931472 : f32
    %10 = vector.broadcast %cst_5 : f32 to vector<1x8x32xf32>
    %11 = arith.mulf %7, %10 : vector<1x8x32xf32>
    %c0_6 = arith.constant 0 : index
    %c0_7 = arith.constant 0 : index
    %c0_8 = arith.constant 0 : index
    %12 = vector.load %arg4[%c0_6, %c0_7, %c0_8] : memref<1x8x32xf32, #tpu.memory_space<vmem>>, vector<1x8x32xf32>
    tpu.vector_store %arg4[%c0_6, %c0_7, %c0_8], %9 {strides = array<i32>} : memref<1x8x32xf32, #tpu.memory_space<vmem>>, vector<1x8x32xf32>,
    %c0_9 = arith.constant 0 : index
    %c0_10 = arith.constant 0 : index
    %c0_11 = arith.constant 0 : index
    %13 = vector.load %arg5[%c0_9, %c0_10, %c0_11] : memref<1x8x32xf32, #tpu.memory_space<vmem>>, vector<1x8x32xf32>
    tpu.vector_store %arg5[%c0_9, %c0_10, %c0_11], %11 {strides = array<i32>} : memref<1x8x32xf32, #tpu.memory_space<vmem>>, vector<1x8x32xf32>,
    return
  }
  func.func @transform_0(%arg0: i32, %arg1: i32) -> (i32, i32, i32) {
    %c0_i32 = arith.constant 0 : i32
    %c0_i32_0 = arith.constant 0 : i32
    return %arg0, %arg1, %c0_i32 : i32, i32, i32
  }
  func.func @transform_1(%arg0: i32, %arg1: i32) -> (i32, i32, i32) {
    %c0_i32 = arith.constant 0 : i32
    %c0_i32_0 = arith.constant 0 : i32
    %c0_i32_1 = arith.constant 0 : i32
    %c0_i32_2 = arith.constant 0 : i32
    return %c0_i32, %c0_i32_0, %c0_i32_1 : i32, i32, i32
  }
  func.func @transform_2(%arg0: i32, %arg1: i32) -> (i32, i32, i32) {
    %c0_i32 = arith.constant 0 : i32
    %c0_i32_0 = arith.constant 0 : i32
    return %arg0, %arg1, %c0_i32 : i32, i32, i32
  }
  func.func @transform_3(%arg0: i32, %arg1: i32) -> (i32, i32, i32) {
    %c0_i32 = arith.constant 0 : i32
    %c0_i32_0 = arith.constant 0 : i32
    return %arg0, %arg1, %c0_i32 : i32, i32, i32
  }
}

</mosaic_0001>

<bundles_post_ra>
// kernel: tpu_custom_call.1
= control target key start
LH: loop header
LB: loop body
LE: loop exit
PB: predicated region body
PF: predicated region fallthrough
CT: control target
= control target key end

     0   :  { %9 = vsyncpa [#allocation3], 0  ;;  %s978_s0 = inlined_call_operand.vmem [shape: s32[2,8,1], index: 0, kind: input, shape index: {}]   ;;  %s979_s1 = inlined_call_operand.vmem [shape: f32[1,1,32], index: 1, kind: input, shape index: {}]   ;;  %s980_s2 = inlined_call_operand.hbm [shape: f32[2,8,32], index: 2, kind: output, shape index: {0}]   ;;  %s981_s3 = inlined_call_operand.hbm [shape: f32[2,8,32], index: 3, kind: output, shape index: {1}]  }
   0x1   :  { %11 = vsyncpa [#allocation3 + $0x1], 0 }
   0x2   :  { %12 = vsyncpa [#allocation5], 0 }
   0x3   :  { %14 = vsyncpa [#allocation5 + $0x1], 0  ;;  %s809_s12 = smov 0   ;;  %s811_s13 = smov 0  }
   0x4   :  { %s813_s14 = smov 0   ;;  %s815_s15 = smov 0  }
   0x5   :  { %s817_s16 = smov 0   ;;  %s819_s17 = smov 0  }
   0x6 LB: > { %s569_s18 = sadd.s32 4294967295, %s778_s17   ;;  %s570_s19 = sadd.s32 4294967294, %s778_s17   ;;  %s778_s17 = sphi %s819_s17, %s20_s17   ;;  %s774_s16 = sphi %s817_s16, %s988_s16   ;;  %s770_s15 = sphi %s815_s15, %s987_s15   ;;  %s766_s14 = sphi %s813_s14, %s986_s14   ;;  %s762_s13 = sphi %s811_s13, %s985_s13   ;;  %s758_s12 = sphi %s809_s12, %s984_s12  }
   0x7   : > { %s32_s20 = sadd.s32 1, %s774_s16  ;;  %s90_s21 = sadd.s32 1, %s766_s14 }
   0x8   : > { %p34_p0 = scmp.ge.s32.totalorder %s32_s20, 2  ;;  %p100_p1 = scmp.ne.s32.totalorder %s766_s14, %s762_s13 }
   0x9   : > { %p101_p2 = scmp.eq.s32.totalorder %s569_s18, 1  ;;  %p106_p3 = scmp.ne.s32.totalorder %s762_s13, %s758_s12 }
   0xa   : > { %s990_s20 = smov (%p34_p0, %s32_s20), 0  ;;  %p107_p5 = scmp.eq.s32.totalorder %s570_s19, 1 }
   0xb   : > { %p849_p4 = por %p101_p2, %p100_p1  ;;  %s85_s23 = ssub.s32 %s774_s16, %s990_s20 }
   0xc   : > { %p573_p6 = scmp.ge.s32.totalorder %s778_s17, 1  ;;  %p88_p7 = scmp.eq.s32.totalorder %s85_s23, 0 }
   0xd   : > { %p856_p8 = por %p107_p5, %p106_p3  ;;  %p166_p9 = scmp.lt.s32.totalorder %s778_s17, 3 }
   0xe   : > { %s862_s25 = scalar_select %p88_p7, %s766_s14, %s90_s21  }
   0xf   : > { %p167_p10 = pnand %p573_p6, %p166_p9 }
  0x10   : > { %p197_p11 = scmp.lt.s32.totalorder (!%p167_p10), %s770_s15, 1  ;;  %v780_v0 = vmov (!%p167_p10), 0   ;;  %v577_v3 = vld [vmem:[%s979_s1] ss:$0 sm:$0xff] (!%p167_p10)  ;;  %v781_v16 = vmov (!%p167_p10), 683565275  }
  0x11   : > { %170 = sbr.rel (%p167_p10) target bundleno = 279 (0x117), region = 28  ;;  %663 = vset.pattern.permute.xlu0 (!%p167_p10), %v780_v0  ;;  %v782_v18 = vmov (!%p167_p10), 2475754826   ;;  %v783_v21 = vmov (!%p167_p10), 2131351028   ;;  %s893_s6 = sand.u32 (!%p167_p10), 1, %s762_s13  }
  0x12   : > { %v784_v24 = vmov (!%p167_p10), 2102212464   ;;  %v785_v27 = vmov (!%p167_p10), 920167782   ;;  %v786_v30 = vmov (!%p167_p10), 1326507024  }
  0x13   : > { %s574_s7 = sshll.u32 (!%p167_p10), %s893_s6, 3  ;;  %s588_s8 = sshll.u32 (!%p167_p10), %s770_s15, 7 }
  0x14   : > { %s189_s9 = scalar_lea.vmem (!%p167_p10), [#allocation2], %s574_s7  ;;  %s196_s11 = scalar_lea.vmem (!%p167_p10), [#allocation4], %s574_s7 }
  0x15   : > { %s451_s10 = sshll.u32 (!%p167_p10), %s189_s9, 4  ;;  %s465_s18 = sshll.u32 (!%p167_p10), %s196_s11, 4  ;;  %s903_s10 = int_to_ptr.vmem [resolvable:$true] %s451_s10  ;;  %s910_s18 = int_to_ptr.vmem [resolvable:$true] %s465_s18 }
  0x16   : > { %s901_s21 = scalar_lea.hbm (!%p167_p10), %s980_s2, %s588_s8  ;;  %s432_s28 = scalar_lea.sflag (!%p167_p10), [#allocation3], %s893_s6 }
  0x17   : > { %s668_s29 = scalar_lea.vmem (!%p167_p10), %s903_s10, 128 }
  0x18   : > { %s198_s26 = scalar_select %p197_p11, %s770_s15, 1 }
  0x19   : > { %p669_p12 = scmp.ne.s32.totalorder %s903_s10, %s668_s29 }
  0x1a   : > { %s576_s27 = sshll.u32 %s198_s26, 3 }
  0x1b   : > { %s203_s30 = scalar_lea.vmem %s978_s0, %s576_s27  ;;  %s908_s27 = scalar_lea.hbm %s981_s3, %s588_s8 }
  0x1c   : > { %v204_v1 = vld [vmem:[%s203_s30] sm:$0xff]  ;;  %p670_p13 = pnand %p669_p12, %p849_p4  ;;  %s787_s30 = smov [#allocation2]  }
  0x1d   : > { %v205_v2 = vcvt.s32.f32 %v204_v1  ;;  %s672_s4 = sshll.u32 %s787_s30, 4  ;;  %s673_s4 = int_to_ptr.vmem [resolvable:$false] %s672_s4 }
  0x1e   : > { %p671_p0 = pneg %p670_p13  ;;  %s674_s5 = scalar_lea.vmem %s673_s4, 256 }
  0x1f   : > { %209 = vperm.xlu0 %663, %v205_v2   ;;  %p675_p1 = scmp.lt.s32.totalorder %s903_s10, %s673_s4  ;;  %p676_p2 = scmp.lt.s32.totalorder %s674_s5, %s668_s29 }
  0x21   : > { %p677_p3 = por %p676_p2, %p675_p1 }
  0x23   : > { %p678_p5 = pnand %p677_p3, %p671_p0 }
  0x9e   : > { %v210_v4 = vpop.permute.xlu0 %209 }
  0x9f   : > { %v872_v5 = vmul.f32 %v577_v3, %v210_v4 }
  0xa1   : > { %v222_v6 = vand.u32 2139095040, %v872_v5  ;;  %v219_v10 = vand.u32 2147483647, %v872_v5  ;;  %vm221_vm7 = vcmp.lt.s32.totalorder %v872_v5, 0  ;;  %vm311_vm15 = vweird.f32 %v872_v5 }
  0xa3   : > { %v223_v7 = vshrl.u32 %v222_v6, 23  ;;  %v226_v13 = vand.u32 8388607, %v219_v10  ;;  %vm220_vm8 = vcmp.le.f32.partialorder %v219_v10, 0.7853982 }
  0xa5   : > { %v578_v8 = vadd.s32 4294967169, %v223_v7  ;;  %v227_v32 = vor.u32 8388608, %v226_v13 }
  0xa7   : > { %v229_v9 = vadd.s32 1, %v578_v8  ;;  %v267_v46 = vshll.u32 %v227_v32, 8 }
  0xa9   : > { %vm230_vm0 = vcmp.gt.s32.totalorder %v229_v9, 0 }
  0xaa   : > { %v231_v11 = vsel %vm230_vm0, %v229_v9, 0  ;;  %vm428_vm0 = vcmask 261120  }
  0xab   : > { %v233_v12 = vand.u32 31, %v231_v11  ;;  %v232_v15 = vshrl.u32 %v231_v11, 5 }
  0xad   : > { %v234_v14 = vsub.s32 32, %v233_v12  ;;  %v236_v17 = vshll.u32 %v781_v16, %v233_v12  ;;  %v239_v19 = vshll.u32 %v782_v18, %v233_v12  ;;  %v242_v23 = vshll.u32 %v783_v21, %v233_v12 }
  0xae   : > { %v245_v26 = vshll.u32 %v784_v24, %v233_v12  ;;  %v248_v29 = vshll.u32 %v785_v27, %v233_v12  ;;  %vm251_vm1 = vcmp.lt.s32.totalorder %v232_v15, 1  ;;  %vm254_vm2 = vcmp.lt.s32.totalorder %v232_v15, 4 }
  0xaf   : > { %v237_v20 = vshrl.u32 %v782_v18, %v234_v14  ;;  %v240_v22 = vshrl.u32 %v783_v21, %v234_v14  ;;  %v243_v25 = vshrl.u32 %v784_v24, %v234_v14  ;;  %v246_v28 = vshrl.u32 %v785_v27, %v234_v14 }
  0xb0   : > { %v249_v31 = vshrl.u32 %v786_v30, %v234_v14  ;;  %v235_v41 = vshrl.u32 %v781_v16, %v234_v14  ;;  %vm253_vm3 = vcmp.lt.s32.totalorder %v232_v15, 3  ;;  %vm252_vm4 = vcmp.lt.s32.totalorder %v232_v15, 2 }
  0xb1   : > { %v238_v33 = vor.u32 %v237_v20, %v236_v17  ;;  %v241_v34 = vor.u32 %v240_v22, %v239_v19  ;;  %v244_v35 = vor.u32 %v243_v25, %v242_v23  ;;  %v247_v36 = vor.u32 %v246_v28, %v245_v26 }
  0xb2   : > { %v250_v37 = vor.u32 %v249_v31, %v248_v29 }
  0xb3   : > { %v256_v38 = vsel %vm254_vm2, %v244_v35, 2102212464  ;;  %v259_v39 = vsel %vm251_vm1, %v238_v33, %v241_v34  ;;  %v263_v40 = vsel %vm251_vm1, %v241_v34, %v244_v35  ;;  %v260_v42 = vsel %vm254_vm2, %v247_v36, 920167782 }
  0xb4   : > { %v264_v43 = vsel %vm254_vm2, %v250_v37, 1326507024  ;;  %v261_v44 = vsel %vm253_vm3, %v244_v35, %v260_v42  ;;  %v255_v47 = vsel %vm251_vm1, %v235_v41, %v238_v33  ;;  %v257_v48 = vsel %vm253_vm3, %v241_v34, %v256_v38 }
  0xb5   : > { %v265_v45 = vsel %vm253_vm3, %v247_v36, %v264_v43  ;;  %v262_v49 = vsel %vm252_vm4, %v259_v39, %v261_v44  ;;  %v258_v55 = vsel %vm252_vm4, %v255_v47, %v257_v48 }
  0xb6   : > { %v266_v50 = vsel %vm252_vm4, %v263_v40, %v265_v45  ;;  %v881_v53 = vmul.u32.u64.low %v267_v46, %v262_v49  ;;  %v882_v54 = vmul.u32.u64.high %v267_v46, %v262_v49, %v881_v53  ;;  %v274_v57 = vmul.u32 %v267_v46, %v258_v55 }
  0xb7   : > { %v878_v51 = vmul.u32.u64.low %v267_v46, %v266_v50  ;;  %v879_v52 = vmul.u32.u64.high %v267_v46, %v266_v50, %v878_v51 }
  0xb8   : > { %v277_v56 = vadd.s32 1, %v882_v54 }
  0xb9   : > { %vm276_vm5 = vc.u32 %v879_v52, %v881_v53  ;;  %v275_v6 = vadd.s32 %v881_v53, %v879_v52 }
  0xba   : > { %v278_v58 = vsel %vm276_vm5, %v277_v56, %v882_v54 }
  0xbb   : > { %v279_v59 = vadd.s32 %v278_v58, %v274_v57 }
  0xbd   : > { %v280_v60 = vadd.s32 536870912, %v279_v59 }
  0xbf   : > { %v281_v61 = vshrl.u32 %v280_v60, 30 }
  0xc1   : > { %v282_v62 = vshll.u32 %v281_v61, 30  ;;  %v305_v19 = vsub.s32 4, %v281_v61 }
  0xc3   : > { %v283_v63 = vsub.s32 %v279_v59, %v282_v62  ;;  %v306_v22 = vsel %vm221_vm7, %v305_v19, %v281_v61 }
  0xc4   : > { %v308_v24 = vsel %vm220_vm8, 0, %v306_v22 }
  0xc5   : > { %v285_v0 = vsub.s32 0, %v283_v63  ;;  %v415_v25 = vadd.s32 3, %v308_v24  ;;  %v312_v26 = vand.u32 3, %v308_v24 }
  0xc7   : > { %v579_v1 = vmin.u32 %v285_v0, %v283_v63  ;;  %v416_v27 = vand.u32 3, %v415_v25  ;;  %vm317_vm9 = vcmp.eq.s32.totalorder %v312_v26, 2  ;;  %vm314_vm11 = vcmp.eq.s32.totalorder %v312_v26, 0 }
  0xc8   : > { %vm313_vm13 = vcmp.lt.s32.totalorder %v312_v26, 2 }
  0xc9   : > { %v287_v2 = vclz %v579_v1  ;;  %vm421_vm10 = vcmp.eq.s32.totalorder %v416_v27, 2  ;;  %vm418_vm12 = vcmp.eq.s32.totalorder %v416_v27, 0  ;;  %vm417_vm14 = vcmp.lt.s32.totalorder %v416_v27, 2 }
  0xcb   : > { %v580_v3 = vadd.s32 4294967294, %v287_v2 }
  0xcd   : > { %vm581_vm6 = vcmp.lt.s32.totalorder %v580_v3, 0 }
  0xce   : > { %v290_v4 = vsel %vm581_vm6, 0, %v580_v3 }
  0xcf   : > { %v291_v7 = vsub.s32 32, %v290_v4  ;;  %v295_v8 = vsub.s32 4294967266, %v290_v4  ;;  %v292_v9 = vshll.u32 %v283_v63, %v290_v4 }
  0xd1   : > { %v293_v11 = vshrl.u32 %v275_v6, %v291_v7  ;;  %v296_v12 = vadd.s32 127, %v295_v8 }
  0xd3   : > { %v294_v13 = vor.u32 %v293_v11, %v292_v9  ;;  %v297_v14 = vshll.u32 %v296_v12, 23 }
  0xd5   : > { %v298_v15 = vor.u32 4788187, %v297_v14  ;;  %v301_v17 = vcvt.s32.f32 %v294_v13 }
  0xd7   : > { %v299_v16 = vand.u32 2147483647, %v298_v15 }
  0xd9   : > { %v302_v18 = vmul.f32 %v301_v17, %v299_v16 }
  0xdb   : > { %v303_v20 = vxor.u32 2147483648, %v302_v18 }
  0xdd   : > { %v304_v21 = vsel %vm221_vm7, %v303_v20, %v302_v18 }
  0xde   : > { %v307_v23 = vsel %vm220_vm8, %v872_v5, %v304_v21 }
  0xdf   : > { %664 = vcosq.f32 %v307_v23 }
  0xe0   : > { %666 = vsinq.f32 %v307_v23 }
  0xe9   : > { %v665_v28 = vpop.eup %664 }
  0xea   : > { %v667_v29 = vpop.eup %666  ;;  %v318_v30 = vxor.u32 2147483648, %v665_v28 }
  0xeb   : > { %v315_v31 = vxor.u32 2147483648, %v667_v29 }
  0xec   : > { %v319_v10 = vsel %vm317_vm9, %v318_v30, %v667_v29  ;;  %v423_v32 = vsel %vm421_vm10, %v318_v30, %v667_v29 }
  0xed   : > { %v316_v33 = vsel %vm314_vm11, %v665_v28, %v315_v31  ;;  %v420_v34 = vsel %vm418_vm12, %v665_v28, %v315_v31 }
  0xee   : > { %v320_v35 = vsel %vm313_vm13, %v316_v33, %v319_v10  ;;  %v424_v36 = vsel %vm417_vm14, %v420_v34, %v423_v32 }
  0xef   : > { %v321_v37 = vsel %vm311_vm15, nan, %v320_v35  ;;  %v425_v38 = vsel %vm311_vm15, nan, %v424_v36 }
  0xf0   : > { %v426_v39 = vmul.f32 1.0693147, %v321_v37  ;;  %v427_v5 = vmul.f32 1.0693147, %v425_v38 }
  0xf2   : > { %429 = vst.msk [vmem:[%s189_s9] sm:$0xff] %vm428_vm0, %v426_v39  ;;  %430 = vst.msk [vmem:[%s196_s11] sm:$0xff] %vm428_vm0, %v427_v5 }
  0xf3   : > { %681 = shalt.err (!%p678_p5)
}
  0xf4   : > { %s682_s7 = scalar_lea.hbm %s901_s21, 128  ;;  %s686_s11 = scalar_lea.hbm %s980_s2, 256 }
  0xf5   : > { %p683_p6 = scmp.ne.s32.totalorder %s901_s21, %s682_s7  ;;  %p687_p10 = scmp.lt.u32.totalorder %s901_s21, %s980_s2 }
  0xf6   : > { %p688_p11 = scmp.lt.u32.totalorder %s686_s11, %s682_s7  ;;  %p690_p13 = scmp.lt.u32.totalorder %s682_s7, %s901_s21 }
  0xf7   : > { %p684_p7 = pnand %p683_p6, %p849_p4 }
  0xf8   : > { %p689_p12 = por %p688_p11, %p687_p10 }
  0xf9   : > { %p685_p9 = pneg %p684_p7 }
  0xfa   : > { %p691_p0 = por %p690_p13, %p689_p12 }
  0xfc   : > { %p692_p1 = pnand %p691_p0, %p685_p9 }
  0xfe   : > { %695 = shalt.err (!%p692_p1)
}
  0xff   : > { %596 = dma.vmem_to_hbm [thread:$0]  (%p849_p4), %s903_s10, 128, %s901_s21, %s432_s28  }
 0x100   : > { %s437_s23 = scalar_lea.sflag [#allocation5], %s893_s6  ;;  %s696_s26 = scalar_lea.vmem %s910_s18, 128 }
 0x101   : > { %p697_p2 = scmp.ne.s32.totalorder %s910_s18, %s696_s26  ;;  %s788_s29 = smov [#allocation4]  }
 0x102   : > { %s700_s30 = sshll.u32 %s788_s29, 4  ;;  %s701_s30 = int_to_ptr.vmem [resolvable:$false] %s700_s30 }
 0x103   : > { %p698_p3 = pnand %p697_p2, %p849_p4  ;;  %s702_s4 = scalar_lea.vmem %s701_s30, 256 }
 0x104   : > { %p703_p6 = scmp.lt.s32.totalorder %s910_s18, %s701_s30  ;;  %p704_p7 = scmp.lt.s32.totalorder %s702_s4, %s696_s26 }
 0x105   : > { %p699_p5 = pneg %p698_p3 }
 0x106   : > { %p705_p9 = por %p704_p7, %p703_p6 }
 0x108   : > { %p706_p10 = pnand %p705_p9, %p699_p5 }
 0x10a   : > { %709 = shalt.err (!%p706_p10)
}
 0x10b   : > { %s710_s6 = scalar_lea.hbm %s908_s27, 128  ;;  %s714_s28 = scalar_lea.hbm %s981_s3, 256 }
 0x10c   : > { %p711_p11 = scmp.ne.s32.totalorder %s908_s27, %s710_s6  ;;  %p715_p0 = scmp.lt.u32.totalorder %s908_s27, %s981_s3 }
 0x10d   : > { %p716_p1 = scmp.lt.u32.totalorder %s714_s28, %s710_s6  ;;  %p718_p3 = scmp.lt.u32.totalorder %s710_s6, %s908_s27 }
 0x10e   : > { %p712_p12 = pnand %p711_p11, %p849_p4 }
 0x10f   : > { %p717_p2 = por %p716_p1, %p715_p0 }
 0x110   : > { %p713_p13 = pneg %p712_p12 }
 0x111   : > { %p719_p5 = por %p718_p3, %p717_p2 }
 0x113   : > { %p720_p6 = pnand %p719_p5, %p713_p13 }
 0x115   : > { %723 = shalt.err (!%p720_p6)
}
 0x116   : > { %597 = dma.vmem_to_hbm [thread:$0]  (%p849_p4), %s910_s18, 128, %s908_s27, %s437_s23  }
 0x117 PF: > { %p607_p7 = scmp.ge.s32.totalorder %s778_s17, 2  ;;  %s477_s8 = sand.u32 1, %s758_s12  }
 0x118   : > { %s478_s9 = scalar_lea.sflag [#allocation3], %s477_s8 }
 0x119   : > { %p601_p9 = pnand %p607_p7, %p856_p8 }
 0x11b   : > { %749 = dma.done.wait (!%p601_p9), %s478_s9, 128  }
 0x11c   : > { %751 = vsyncadd (!%p601_p9), %s478_s9, 4294967168  ;;  %s487_s11 = scalar_lea.sflag [#allocation5], %s477_s8 }
 0x11d   : > { %753 = dma.done.wait (!%p601_p9), %s487_s11, 128  }
 0x11e   : > { %755 = vsyncadd (!%p601_p9), %s487_s11, 4294967168  ;;  %s20_s17 = sadd.s32 1, %s778_s17   ;;  %s984_s12 = smov %s762_s13 }
 0x11f   : > { %p17_p10 = scmp.ge.s32.totalorder %s20_s17, 4   ;;  %s985_s13 = smov %s766_s14 }
 0x120   : > { %s986_s14 = smov %s862_s25  ;;  %s987_s15 = smov %s774_s16 }
 0x121   : > { %s988_s16 = smov %s990_s20  ;;  %19 = sbr.rel (!%p17_p10) target bundleno = 6 (0x6), region = 80 }
 0x128   :  { %492 = vsyncpa [#allocation3], 1 }
 0x129   :  { %494 = vsyncpa [#allocation3 + $0x1], 1 }
 0x12a   :  { %495 = vsyncpa [#allocation5], 1 }
 0x12b   :  { %497 = vsyncpa [#allocation5 + $0x1], 1 }

</bundles_post_ra>
